<compile_context>
chip_gen: v7x
topology: tpu7x:2x2x1
jax: 0.10.0
libtpu: 0.0.40
codegen_flags: <defaults>
</compile_context>

<pallas_src>
import functools

import jax
import jax.numpy as jnp
from jax.experimental import pallas as pl
from jax.experimental.pallas import tpu as pltpu

GAMMA = 1.5
ALPHA = 0.25
LANES = 128
NUM_CORES = 2                        # v7x: 2 TCs; harmless (sequential) elsewhere
DEFAULT_BLOCK_ROWS = 4096            # 4096 x 128 x 4B = 2 MiB per f32 input block
VMEM_LIMIT_BYTES = 48 * 1024 * 1024
PRED_PAD_VALUE = -1e4                # finite & very negative -> exactly 0 loss


def _round_up(x, m):
    return ((x + m - 1) // m) * m


def _cdiv(a, b):
    return -(-a // b)


def _row_tile(dtype):
    # Sublane tile for the block's second-to-last dim: 8 (f32), 16 (bf16), 32 (i8).
    return max(8, 32 // jnp.dtype(dtype).itemsize)


def _focal_kernel(pred_ref, true_ref, out_ref, *, gamma, alpha, block_rows,
                  rows_total, steps_per_core, has_partial):
    c = pl.program_id(0)             # core axis ("parallel")
    i = pl.program_id(1)             # streaming axis ("arbitrary")

    @pl.when(i == 0)
    def _():
        out_ref[...] = jnp.zeros_like(out_ref)

    x = pred_ref[...].astype(jnp.float32)
    t = true_ref[...].astype(jnp.float32)

    # Stable BCE-with-logits (reduction='none'): max(x,0) - x*t + log1p(exp(-|x|))
    e = jnp.exp(-jnp.abs(x))                          # shared transcendental
    bce = jnp.maximum(x, 0.0) - x * t + jnp.log1p(e)

    # sigmoid from the same exp(-|x|):  x>=0: 1/(1+e);  x<0: e/(1+e)
    s_pos = 1.0 / (1.0 + e)
    p = jnp.where(x >= 0.0, s_pos, e * s_pos)

    # u = 1 - p_t = p + t*(1-2p) >= 0;  alpha_factor affine in t.
    u = p + t * (1.0 - 2.0 * p)
    alpha_factor = (1.0 - alpha) + t * (2.0 * alpha - 1.0)
    if gamma == 1.5:
        modulating_factor = u * jnp.sqrt(u)
    else:
        modulating_factor = jnp.power(jnp.maximum(u, 0.0), gamma)

    loss = bce * alpha_factor * modulating_factor

    def _accumulate(vals):
        # Vreg-shaped partial sums: pure VPU adds into the resident out block.
        out_ref[...] += vals.reshape(1, block_rows // 8, 8, LANES).sum(axis=1)

    if not has_partial:
        _accumulate(loss)
    else:
        # Only ragged / duplicated tail blocks pay for masking.  Row-based
        # mask (rows = elements/128) keeps int32 math safe for huge inputs.
        g = c * steps_per_core + i                    # unclamped global block id
        valid_rows = rows_total - g * block_rows      # <= 0 for duplicated blocks

        @pl.when(valid_rows >= block_rows)
        def _():
            _accumulate(loss)

        @pl.when(valid_rows < block_rows)
        def _():
            row = jax.lax.broadcasted_iota(jnp.int32, (block_rows, LANES), 0)
            _accumulate(jnp.where(row < valid_rows, loss, 0.0))


def focal_loss(pred, true, gamma=GAMMA, alpha=ALPHA,
               block_rows=DEFAULT_BLOCK_ROWS):
    """pred, true: arrays of identical shape (e.g. NCHW). Returns scalar f32 mean loss."""
    assert pred.shape == true.shape
    n = int(pred.size)

    row_tile = max(_row_tile(pred.dtype), _row_tile(true.dtype))
    rows = _cdiv(n, LANES)
    rows_padded = _round_up(rows, row_tile)
    padded_n = rows_padded * LANES

    pred_flat = pred.reshape(-1)
    true_flat = true.reshape(-1)
    if padded_n != n:
        # Ragged tail only (< row_tile*128 elements of pad): sentinel values
        # give exactly 0 loss, so no element-level masking in the hot path.
        pad = padded_n - n
        pred_flat = jnp.concatenate(
            [pred_flat, jnp.full((pad,), PRED_PAD_VALUE, pred_flat.dtype)])
        true_flat = jnp.concatenate(
            [true_flat, jnp.zeros((pad,), true_flat.dtype)])
    pred2d = pred_flat.reshape(rows_padded, LANES)
    true2d = true_flat.reshape(rows_padded, LANES)

    br = min(_round_up(block_rows, row_tile), rows_padded)
    total_blocks = _cdiv(rows_padded, br)
    steps_per_core = _cdiv(total_blocks, NUM_CORES)
    grid = (NUM_CORES, steps_per_core)
    # Masking needed only if the last block is partial or some (core, step)
    # pairs are clamped duplicates of the last block.
    has_partial = (rows_padded % br != 0) or \
        (NUM_CORES * steps_per_core != total_blocks)

    def in_map(c, i):
        # Clamp so trailing duplicate steps re-read the last in-bounds block
        # (their contribution is masked to zero in the kernel).
        return (jnp.minimum(c * steps_per_core + i, total_blocks - 1), 0)

    kernel = functools.partial(
        _focal_kernel, gamma=gamma, alpha=alpha, block_rows=br,
        rows_total=rows_padded, steps_per_core=steps_per_core,
        has_partial=has_partial)

    bytes_in = (pred2d.size * pred2d.dtype.itemsize
                + true2d.size * true2d.dtype.itemsize)
    cost = pl.CostEstimate(
        flops=18 * padded_n,
        transcendentals=3 * padded_n,
        bytes_accessed=bytes_in + NUM_CORES * 8 * LANES * 4,
    )

    partial_sums = pl.pallas_call(
        kernel,
        out_shape=jax.ShapeDtypeStruct((NUM_CORES, 8, LANES), jnp.float32),
        grid_spec=pltpu.PrefetchScalarGridSpec(
            num_scalar_prefetch=0,
            grid=grid,
            in_specs=[
                pl.BlockSpec((br, LANES), in_map),
                pl.BlockSpec((br, LANES), in_map),
            ],
            out_specs=pl.BlockSpec((1, 8, LANES), lambda c, i: (c, 0, 0)),
        ),
        compiler_params=pltpu.CompilerParams(
            dimension_semantics=("parallel", "arbitrary"),
            vmem_limit_bytes=VMEM_LIMIT_BYTES,
        ),
        cost_estimate=cost,
    )(pred2d, true2d)

    # reduction == 'mean': tiny (2,8,128) final reduce + divide in plain JAX.
    # TODO(synk): reduction='sum'/'none' variants of the PyTorch module are not
    # implemented (default BCEWithLogitsLoss uses reduction='mean').
    return jnp.sum(partial_sums) / jnp.float32(n)


def focal_loss_ref(pred, true, gamma=GAMMA, alpha=ALPHA):
    x = pred.astype(jnp.float32)
    t = true.astype(jnp.float32)
    bce = jnp.maximum(x, 0.0) - x * t + jnp.log1p(jnp.exp(-jnp.abs(x)))
    p = jax.nn.sigmoid(x)
    p_t = t * p + (1.0 - t) * (1.0 - p)
    af = t * alpha + (1.0 - t) * (1.0 - alpha)
    mf = (1.0 - p_t) ** gamma
    return jnp.mean(bce * af * mf)


if __name__ == "__main__":
    key = jax.random.PRNGKey(0)
    k1, k2 = jax.random.split(key)
    # NCHW, matching the PyTorch module: batch=2, channels=4, spatial=16.
    shape = (2, 4, 16, 16)
    pred = jax.random.normal(k1, shape, dtype=jnp.float32) * 2.0
    true = (jax.random.uniform(k2, shape) > 0.7).astype(jnp.float32)

    out = jax.block_until_ready(focal_loss(pred, true))
    ref = focal_loss_ref(pred, true)
    assert jnp.allclose(out, ref, rtol=1e-5, atol=1e-6), (out, ref)

    # Ragged size (not divisible by 128) -> sentinel-pad + masked tail block.
    k3, k4 = jax.random.split(k1)
    shape2 = (3, 5, 7, 11)   # 1155 elements
    pred2 = jax.random.normal(k3, shape2, dtype=jnp.float32) * 2.0
    true2 = (jax.random.uniform(k4, shape2) > 0.6).astype(jnp.float32)
    out2 = jax.block_until_ready(focal_loss(pred2, true2))
    ref2 = focal_loss_ref(pred2, true2)
    assert jnp.allclose(out2, ref2, rtol=1e-5, atol=1e-6), (out2, ref2)

    # Native bf16 streaming path (halves HBM bytes; cast to f32 in-kernel).
    k5, k6 = jax.random.split(k2)
    pred3 = (jax.random.normal(k5, shape, dtype=jnp.float32) * 2.0).astype(jnp.bfloat16)
    true3 = (jax.random.uniform(k6, shape) > 0.5).astype(jnp.bfloat16)
    out3 = jax.block_until_ready(focal_loss(pred3, true3))
    ref3 = focal_loss_ref(pred3, true3)
    assert jnp.allclose(out3, ref3, rtol=1e-4, atol=1e-5), (out3, ref3)

    print("KERNEL_OK")
</pallas_src>

<mosaic_0001>
module attributes {stable_mosaic.version = 11 : i64} {
  func.func @_focal_kernel(%arg0: i32, %arg1: i32, %arg2: memref<16x128xf32, #tpu.memory_space<vmem>>, %arg3: memref<16x128xf32, #tpu.memory_space<vmem>>, %arg4: memref<1x8x128xf32, #tpu.memory_space<vmem>>) attributes {dimension_semantics = [#tpu.dimension_semantics<parallel>, #tpu.dimension_semantics<arbitrary>], iteration_bounds = array<i64: 2, 1>, scalar_prefetch = 0 : i64, scratch_operands = 0 : i64, tpu.core_type = #tpu.core_type<tc>, window_params = [{transform_indices = @transform_0, window_bounds = array<i64: 16, 128>}, {transform_indices = @transform_1, window_bounds = array<i64: 16, 128>}, {transform_indices = @transform_2, window_bounds = array<i64: 1, 8, 128>}]} {
    %c0_i32 = arith.constant 0 : i32
    %0 = arith.cmpi eq, %arg1, %c0_i32 : i32
    %1 = arith.extui %0 : i1 to i32
    %c0_i32_0 = arith.constant 0 : i32
    %2 = arith.cmpi ne, %1, %c0_i32_0 : i32
    scf.if %2 {
      %cst_17 = arith.constant 0.000000e+00 : f32
      %47 = vector.broadcast %cst_17 : f32 to vector<1x8x128xf32>
      %c0_18 = arith.constant 0 : index
      %c0_19 = arith.constant 0 : index
      %c0_20 = arith.constant 0 : index
      %48 = vector.load %arg4[%c0_18, %c0_19, %c0_20] : memref<1x8x128xf32, #tpu.memory_space<vmem>>, vector<1x8x128xf32>
      tpu.vector_store %arg4[%c0_18, %c0_19, %c0_20], %47 {strides = array<i32>} : memref<1x8x128xf32, #tpu.memory_space<vmem>>, vector<1x8x128xf32>,
    } else {
    }
    %c0 = arith.constant 0 : index
    %c0_1 = arith.constant 0 : index
    %3 = vector.load %arg2[%c0, %c0_1] : memref<16x128xf32, #tpu.memory_space<vmem>>, vector<16x128xf32>
    %c0_2 = arith.constant 0 : index
    %c0_3 = arith.constant 0 : index
    %4 = vector.load %arg3[%c0_2, %c0_3] : memref<16x128xf32, #tpu.memory_space<vmem>>, vector<16x128xf32>
    %5 = math.absf %3 : vector<16x128xf32>
    %cst = arith.constant 0.000000e+00 : f32
    %6 = vector.broadcast %cst : f32 to vector<16x128xf32>
    %7 = arith.subf %6, %5 : vector<16x128xf32>
    %8 = math.exp %7 : vector<16x128xf32>
    %cst_4 = arith.constant 0.000000e+00 : f32
    %9 = vector.broadcast %cst_4 : f32 to vector<16x128xf32>
    %10 = arith.maximumf %3, %9 : vector<16x128xf32>
    %11 = arith.mulf %3, %4 : vector<16x128xf32>
    %12 = arith.subf %10, %11 : vector<16x128xf32>
    %13 = math.log1p %8 : vector<16x128xf32>
    %14 = arith.addf %12, %13 : vector<16x128xf32>
    %cst_5 = arith.constant 1.000000e+00 : f32
    %15 = vector.broadcast %cst_5 : f32 to vector<16x128xf32>
    %16 = arith.addf %15, %8 : vector<16x128xf32>
    %cst_6 = arith.constant 1.000000e+00 : f32
    %17 = vector.broadcast %cst_6 : f32 to vector<16x128xf32>
    %18 = arith.divf %17, %16 : vector<16x128xf32>
    %cst_7 = arith.constant 0.000000e+00 : f32
    %19 = vector.broadcast %cst_7 : f32 to vector<16x128xf32>
    %20 = arith.cmpf oge, %3, %19 : vector<16x128xf32>
    %21 = arith.mulf %8, %18 : vector<16x128xf32>
    %22 = arith.select %20, %18, %21 : vector<16x128xi1>, vector<16x128xf32>
    %cst_8 = arith.constant 2.000000e+00 : f32
    %23 = vector.broadcast %cst_8 : f32 to vector<16x128xf32>
    %24 = arith.mulf %23, %22 : vector<16x128xf32>
    %cst_9 = arith.constant 1.000000e+00 : f32
    %25 = vector.broadcast %cst_9 : f32 to vector<16x128xf32>
    %26 = arith.subf %25, %24 : vector<16x128xf32>
    %27 = arith.mulf %4, %26 : vector<16x128xf32>
    %28 = arith.addf %22, %27 : vector<16x128xf32>
    %cst_10 = arith.constant -5.000000e-01 : f32
    %29 = vector.broadcast %cst_10 : f32 to vector<16x128xf32>
    %30 = arith.mulf %4, %29 : vector<16x128xf32>
    %cst_11 = arith.constant 7.500000e-01 : f32
    %31 = vector.broadcast %cst_11 : f32 to vector<16x128xf32>
    %32 = arith.addf %31, %30 : vector<16x128xf32>
    %33 = math.sqrt %28 : vector<16x128xf32>
    %34 = arith.mulf %28, %33 : vector<16x128xf32>
    %35 = arith.mulf %14, %32 : vector<16x128xf32>
    %36 = arith.mulf %35, %34 : vector<16x128xf32>
    %c1_i32 = arith.constant 1 : i32
    %37 = arith.muli %arg0, %c1_i32 : i32
    %38 = arith.addi %37, %arg1 : i32
    %c16_i32 = arith.constant 16 : i32
    %39 = arith.muli %38, %c16_i32 : i32
    %c16_i32_12 = arith.constant 16 : i32
    %40 = arith.subi %c16_i32_12, %39 : i32
    %c16_i32_13 = arith.constant 16 : i32
    %41 = arith.cmpi sge, %40, %c16_i32_13 : i32
    %42 = arith.extui %41 : i1 to i32
    %c0_i32_14 = arith.constant 0 : i32
    %43 = arith.cmpi ne, %42, %c0_i32_14 : i32
    scf.if %43 {
      %c0_17 = arith.constant 0 : index
      %c0_18 = arith.constant 0 : index
      %c0_19 = arith.constant 0 : index
      %47 = vector.load %arg4[%c0_17, %c0_18, %c0_19] : memref<1x8x128xf32, #tpu.memory_space<vmem>>, vector<1x8x128xf32>
      %48 = vector.shape_cast %36 : vector<16x128xf32> to vector<1x2x8x128xf32>
      %cst_20 = arith.constant dense<0.000000e+00> : vector<1x8x128xf32>
      %49 = vector.multi_reduction <add>, %48, %cst_20 [1] : vector<1x2x8x128xf32> to vector<1x8x128xf32>
      %50 = arith.addf %47, %49 : vector<1x8x128xf32>
      %c0_21 = arith.constant 0 : index
      %c0_22 = arith.constant 0 : index
      %c0_23 = arith.constant 0 : index
      %51 = vector.load %arg4[%c0_21, %c0_22, %c0_23] : memref<1x8x128xf32, #tpu.memory_space<vmem>>, vector<1x8x128xf32>
      tpu.vector_store %arg4[%c0_21, %c0_22, %c0_23], %50 {strides = array<i32>} : memref<1x8x128xf32, #tpu.memory_space<vmem>>, vector<1x8x128xf32>,
    } else {
    }
    %c16_i32_15 = arith.constant 16 : i32
    %44 = arith.cmpi slt, %40, %c16_i32_15 : i32
    %45 = arith.extui %44 : i1 to i32
    %c0_i32_16 = arith.constant 0 : i32
    %46 = arith.cmpi ne, %45, %c0_i32_16 : i32
    scf.if %46 {
      %47 = tpu.iota {dimensions = array<i32: 0>} : vector<16x128xi32>
      %48 = vector.broadcast %40 : i32 to vector<16x128xi32>
      %49 = arith.cmpi slt, %47, %48 : vector<16x128xi32>
      %cst_17 = arith.constant 0.000000e+00 : f32
      %50 = vector.broadcast %cst_17 : f32 to vector<16x128xf32>
      %51 = arith.select %49, %36, %50 : vector<16x128xi1>, vector<16x128xf32>
      %c0_18 = arith.constant 0 : index
      %c0_19 = arith.constant 0 : index
      %c0_20 = arith.constant 0 : index
      %52 = vector.load %arg4[%c0_18, %c0_19, %c0_20] : memref<1x8x128xf32, #tpu.memory_space<vmem>>, vector<1x8x128xf32>
      %53 = vector.shape_cast %51 : vector<16x128xf32> to vector<1x2x8x128xf32>
      %cst_21 = arith.constant dense<0.000000e+00> : vector<1x8x128xf32>
      %54 = vector.multi_reduction <add>, %53, %cst_21 [1] : vector<1x2x8x128xf32> to vector<1x8x128xf32>
      %55 = arith.addf %52, %54 : vector<1x8x128xf32>
      %c0_22 = arith.constant 0 : index
      %c0_23 = arith.constant 0 : index
      %c0_24 = arith.constant 0 : index
      %56 = vector.load %arg4[%c0_22, %c0_23, %c0_24] : memref<1x8x128xf32, #tpu.memory_space<vmem>>, vector<1x8x128xf32>
      tpu.vector_store %arg4[%c0_22, %c0_23, %c0_24], %55 {strides = array<i32>} : memref<1x8x128xf32, #tpu.memory_space<vmem>>, vector<1x8x128xf32>,
    } else {
    }
    return
  }
  func.func @transform_0(%arg0: i32, %arg1: i32) -> (i32, i32) {
    %c1_i32 = arith.constant 1 : i32
    %0 = arith.muli %arg0, %c1_i32 : i32
    %1 = arith.addi %0, %arg1 : i32
    %c0_i32 = arith.constant 0 : i32
    %2 = arith.minsi %1, %c0_i32 : i32
    %c0_i32_0 = arith.constant 0 : i32
    %c0_i32_1 = arith.constant 0 : i32
    return %2, %c0_i32_0 : i32, i32
  }
  func.func @transform_1(%arg0: i32, %arg1: i32) -> (i32, i32) {
    %c1_i32 = arith.constant 1 : i32
    %0 = arith.muli %arg0, %c1_i32 : i32
    %1 = arith.addi %0, %arg1 : i32
    %c0_i32 = arith.constant 0 : i32
    %2 = arith.minsi %1, %c0_i32 : i32
    %c0_i32_0 = arith.constant 0 : i32
    %c0_i32_1 = arith.constant 0 : i32
    return %2, %c0_i32_0 : i32, i32
  }
  func.func @transform_2(%arg0: i32, %arg1: i32) -> (i32, i32, i32) {
    %c0_i32 = arith.constant 0 : i32
    %c0_i32_0 = arith.constant 0 : i32
    %c0_i32_1 = arith.constant 0 : i32
    return %arg0, %c0_i32, %c0_i32_0 : i32, i32, i32
  }
}

</mosaic_0001>

<bundles_post_ra>
// kernel: tpu_custom_call.1
= control target key start
LH: loop header
LB: loop body
LE: loop exit
PB: predicated region body
PF: predicated region fallthrough
CT: control target
= control target key end

     0   :  { %7 = vsyncpa [#allocation3], 0  ;;  %s1011_s0 = inlined_call_operand.hbm [shape: f32[16,128], index: 0, kind: input, shape index: {}]   ;;  %s1012_s1 = inlined_call_operand.hbm [shape: f32[16,128], index: 1, kind: input, shape index: {}]   ;;  %s1013_s2 = inlined_call_operand.hbm [shape: f32[2,8,128], index: 2, kind: output, shape index: {}]  }
   0x1   :  { %9 = vsyncpa [#allocation3 + $0x1], 0 }
   0x2   :  { %10 = vsyncpa [#allocation6], 0 }
   0x3   :  { %12 = vsyncpa [#allocation6 + $0x1], 0 }
   0x4   :  { %13 = vsyncpa [#allocation4], 0 }
   0x5   :  { %15 = vsyncpa [#allocation4 + $0x1], 0  ;;  %s792_s9 = smov 0   ;;  %s794_s10 = smov 0  }
   0x6   :  { %s796_s11 = smov 0   ;;  %s798_s12 = smov 0  }
   0x7   :  { %s800_s13 = smov 0   ;;  %s802_s14 = smov 0  }
   0x8   :  { %s804_s15 = smov 0   ;;  %s806_s16 = smov 0  }
   0x9 LB: > { %s469_s17 = sadd.s32 4294967295, %s769_s16   ;;  %s470_s18 = sadd.s32 4294967294, %s769_s16   ;;  %s769_s16 = sphi %s806_s16, %s21_s16   ;;  %s765_s15 = sphi %s804_s15, %s1032_s15   ;;  %s761_s14 = sphi %s802_s14, %s1031_s14   ;;  %s757_s13 = sphi %s800_s13, %s1001_s13   ;;  %s753_s12 = sphi %s798_s12, %s1030_s12   ;;  %s749_s11 = sphi %s796_s11, %s1029_s11   ;;  %s745_s10 = sphi %s794_s10, %s1028_s10   ;;  %s741_s9 = sphi %s792_s9, %s1027_s9  }
   0xa   : > { %s33_s19 = sadd.s32 1, %s765_s15  ;;  %p738_p1 = scmp.ne.s32.totalorder %s757_s13, 0 }
   0xb   : > { %p35_p0 = scmp.ge.s32.totalorder %s33_s19, 2  ;;  %p54_p2 = scmp.eq.s32.totalorder %s769_s16, 0 }
   0xc   : > { %p59_p3 = scmp.ne.s32.totalorder %s757_s13, %s753_s12  ;;  %p60_p5 = scmp.eq.s32.totalorder %s469_s17, 0 }
   0xd   : > { %s1034_s19 = smov (%p35_p0, %s33_s19), 0  ;;  %p838_p4 = por %p738_p1, %p54_p2 }
   0xe   : > { %p842_p6 = por %p60_p5, %p59_p3  ;;  %s101_s22 = ssub.s32 %s765_s15, %s1034_s19 }
   0xf   : > { %p102_p7 = scmp.eq.s32.totalorder %s101_s22, 0  ;;  %s104_s23 = sadd.s32 1, %s749_s11 }
  0x10   : > { %s1017_s21 = scalar_select %p842_p6, 1, 0 }
  0x11   : > { %s850_s24 = scalar_select %p102_p7, %s749_s11, %s104_s23  }
  0x12   : > { %p114_p8 = scmp.ne.s32.totalorder %s749_s11, %s745_s10  ;;  %p115_p9 = scmp.eq.s32.totalorder %s469_s17, 1 }
  0x13   : > { %p120_p10 = scmp.ne.s32.totalorder %s745_s10, %s741_s9  ;;  %p121_p11 = scmp.eq.s32.totalorder %s470_s18, 1 }
  0x14   : > { %p856_p12 = por %p115_p9, %p114_p8  ;;  %p509_p1 = scmp.lt.s32.totalorder %s769_s16, 2 }
  0x15   : > { %p861_p0 = por %p121_p11, %p120_p10  ;;  %s771_s27 = smov [#allocation2]  }
  0x16   : > { %s1018_s25 = scalar_select %p856_p12, 1, 0 }
  0x17   : > { %s1019_s26 = scalar_select %p861_p0, 1, 0 }
  0x18   : > { %s155_s28 = sshll.u32 %s771_s27, 4  ;;  %p868_p2 = pnand %p509_p1, %p838_p4  ;;  %s156_s28 = int_to_ptr.vmem [resolvable:$true] %s155_s28 }
  0x19   : > { %s602_s4 = scalar_lea.hbm %s1011_s0, 256 }
  0x1a   : > { %p603_p3 = scmp.ne.s32.totalorder %s1011_s0, %s602_s4  ;;  %p604_p5 = pneg %p868_p2 }
  0x1b   : > { %p609_p8 = scmp.lt.u32.totalorder %s602_s4, %s602_s4  ;;  %p611_p9 = scmp.lt.u32.totalorder %s602_s4, %s1011_s0 }
  0x1c   : > { %p605_p7 = pnand %p604_p5, %p603_p3 }
  0x1d   : > { %p612_p10 = por %p611_p9, %p609_p8 }
  0x1e   : > { %p606_p4 = pneg %p605_p7 }
  0x20   : > { %p613_p11 = pnand %p612_p10, %p606_p4 }
  0x22   : > { %616 = shalt.err (!%p613_p11)
}
  0x23   : > { %s617_s12 = scalar_lea.vmem %s156_s28, 256  ;;  %s624_s17 = scalar_lea.vmem %s156_s28, 512 }
  0x24   : > { %p618_p1 = scmp.ne.s32.totalorder %s156_s28, %s617_s12  ;;  %p625_p12 = scmp.lt.s32.totalorder %s156_s28, %s156_s28 }
  0x25   : > { %p626_p6 = scmp.lt.s32.totalorder %s624_s17, %s617_s12 }
  0x26   : > { %p620_p13 = pnand %p618_p1, %p604_p5 }
  0x27   : > { %p627_p3 = por %p626_p6, %p625_p12 }
  0x28   : > { %p621_p0 = pneg %p620_p13 }
  0x2a   : > { %p628_p7 = pnand %p627_p3, %p621_p0 }
  0x2c   : > { %631 = shalt.err (!%p628_p7)
}
  0x2d   : > { %s772_s18 = smov 128   ;;  %s773_s20 = smov 8  }
  0x2e   : > { %501 = dma.hbm_to_vmem [thread:$0]  (!%p868_p2), %s1011_s0, 256, %s156_s28, [#allocation3], %s772_s18, %s772_s18, %s773_s20  }
  0x2f   : > { %p479_p13 = scmp.ge.s32.totalorder %s769_s16, 1  ;;  %p187_p4 = scmp.lt.s32.totalorder %s769_s16, 3 }
  0x30   : > { %s774_s30 = smov [#allocation5]   ;;  %s632_s6 = scalar_lea.hbm %s1012_s1, 256 }
  0x31   : > { %p899_p8 = pnand %p479_p13, %p187_p4  ;;  %s179_s3 = sshll.u32 %s774_s30, 4  ;;  %s180_s3 = int_to_ptr.vmem [resolvable:$true] %s179_s3 }
  0x32   : > { %p633_p6 = scmp.ne.s32.totalorder %s1012_s1, %s632_s6  ;;  %p639_p9 = scmp.lt.u32.totalorder %s632_s6, %s632_s6 }
  0x33   : > { %s1021_s27 = scalar_select %p899_p8, 1, 0 }
  0x34   : > { %p635_p12 = pnand %p633_p6, %p604_p5  ;;  %p641_p10 = scmp.lt.u32.totalorder %s632_s6, %s1012_s1 }
  0x36   : > { %p636_p0 = pneg %p635_p12  ;;  %p642_p11 = por %p641_p10, %p639_p9 }
  0x38   : > { %p643_p1 = pnand %p642_p11, %p636_p0 }
  0x3a   : > { %646 = shalt.err (!%p643_p1)
}
  0x3b   : > { %s647_s17 = scalar_lea.vmem %s180_s3, 256  ;;  %s654_s22 = scalar_lea.vmem %s180_s3, 512 }
  0x3c   : > { %p648_p3 = scmp.ne.s32.totalorder %s180_s3, %s647_s17  ;;  %p655_p4 = scmp.lt.s32.totalorder %s180_s3, %s180_s3 }
  0x3d   : > { %p656_p8 = scmp.lt.s32.totalorder %s654_s22, %s647_s17 }
  0x3e   : > { %p650_p7 = pnand %p648_p3, %p604_p5 }
  0x3f   : > { %p657_p6 = por %p656_p8, %p655_p4 }
  0x40   : > { %p651_p13 = pneg %p650_p7 }
  0x42   : > { %p658_p12 = pnand %p657_p6, %p651_p13 }
  0x44   : > { %661 = shalt.err (!%p658_p12)
}
  0x45   : > { %504 = dma.hbm_to_vmem [thread:$0]  (!%p868_p2), %s1012_s1, 256, %s180_s3, [#allocation6], %s772_s18, %s772_s18, %s773_s20  }
  0x46   : > { %p1022_p0 = scmp.ne.s32.totalorder %s1021_s27, 0 }
  0x47   : > { %s193_s4 = sand.u32 (!%p1022_p0), 1, %s757_s13   ;;  %p1023_p5 = scmp.ne.s32.totalorder (!%p1022_p0), %s1017_s21, 0 }
  0x48   : > { %191 = sbr.rel (%p1022_p0) target bundleno = 188 (0xbc), region = 28  ;;  %s480_s5 = sshll.u32 (!%p1022_p0), %s193_s4, 4 }
  0x49   : > { %s194_s6 = scalar_lea.sflag (!%p1022_p0), [#allocation3], %s193_s4  ;;  %s197_s7 = scalar_lea.vmem (!%p1022_p0), [#allocation2], %s480_s5 }
  0x4f   : > { %727 = dma.done.wait (%p1023_p5), %s194_s6, 256  }
  0x50   : > { %729 = vsyncadd (%p1023_p5), %s194_s6, 4294967040  ;;  %s203_s29 = scalar_lea.sflag [#allocation6], %s193_s4  ;;  %s933_s8 = scalar_lea.vmem [#allocation5], %s480_s5 }
  0x51   : > { %731 = dma.done.wait (%p1023_p5), %s203_s29, 256  }
  0x52   : > { %733 = vsyncadd (%p1023_p5), %s203_s29, 4294967040  ;;  %s229_s18 = sand.u32 1, %s745_s10   ;;  %s483_s20 = sshll.u32 %s761_s14, 4  ;;  %v775_v0 = vmov 0.0   ;;  %v245_v1 = vld [vmem:[%s197_s7] sm:$0xff]  ;;  %v246_v2 = vld [vmem:[%s197_s7 + $0x8] sm:$0xff] }
  0x53   : > { %s482_s27 = sshll.u32 %s229_s18, 3  ;;  %s943_s3 = ssub.s32 16, %s483_s20  ;;  %v249_v3 = vand.u32 2147483647, %v245_v1  ;;  %v250_v4 = vand.u32 2147483647, %v246_v2 }
  0x54   : > { %s945_s28 = scalar_lea.vmem [#allocation7], %s482_s27  ;;  %vm289_vm0 = vcmp.ge.f32.partialorder %v245_v1, 0.0  ;;  %vm290_vm1 = vcmp.ge.f32.partialorder %v246_v2, 0.0  ;;  %v247_v20 = vld [vmem:[%s933_s8] sm:$0xff]  ;;  %v248_v22 = vld [vmem:[%s933_s8 + $0x8] sm:$0xff]  ;;  %v257_v37 = vmax.f32 %v245_v1, 0.0 }
  0x55   : > { %244 = vst [vmem:[%s945_s28] sm:$0xff] %v775_v0  ;;  %v251_v5 = vsub.f32 0.0, %v249_v3  ;;  %v252_v6 = vsub.f32 0.0, %v250_v4  ;;  %v259_v38 = vmul.f32 %v247_v20, %v245_v1  ;;  %v258_v39 = vmax.f32 %v246_v2, 0.0  ;;  %p484_p2 = scmp.lt.s32.totalorder %s943_s3, 16 }
  0x56   : > { %v260_v40 = vmul.f32 %v248_v22, %v246_v2  ;;  %v303_v46 = vmul.f32 -0.5, %v247_v20  ;;  %v304_v49 = vmul.f32 -0.5, %v248_v22 }
  0x57   : > { %v253_v7 = vmul.f32 1.442695, %v251_v5  ;;  %v255_v8 = vmul.f32 1.442695, %v252_v6  ;;  %v261_v45 = vsub.f32 %v257_v37, %v259_v38 }
  0x58   : > { %v262_v47 = vsub.f32 %v258_v39, %v260_v40  ;;  %v305_v52 = vadd.f32 0.75, %v303_v46  ;;  %v306_v55 = vadd.f32 0.75, %v304_v49 }
  0x59   : > { %586 = vpow2.f32 %v253_v7 }
  0x5a   : > { %588 = vpow2.f32 %v255_v8 }
  0x5c   : > { %v334_v7 = vld [vmem:[%s945_s28] sm:$0xff] (!%p484_p2) }
  0x63   : > { %v587_v9 = vpop.eup %586 }
  0x64   : > { %v589_v10 = vpop.eup %588  ;;  %v263_v11 = vadd.f32 1.0, %v587_v9  ;;  %v266_v23 = vmul.f32 -0.5, %v587_v9  ;;  %v269_v32 = vand.u32 2147483647, %v587_v9 }
  0x65   : > { %v272_v12 = vadd.f32 1.0, %v589_v10  ;;  %v275_v25 = vmul.f32 -0.5, %v589_v10  ;;  %v278_v36 = vand.u32 2147483647, %v589_v10 }
  0x66   : > { %590 = vrcp.f32 %v263_v11  ;;  %v267_v29 = vadd.f32 1.0, %v266_v23  ;;  %vm270_vm2 = vcmp.lt.f32.partialorder %v269_v32, 0.0004427343 }
  0x67   : > { %592 = vrcp.f32 %v272_v12  ;;  %v276_v33 = vadd.f32 1.0, %v275_v25  ;;  %vm279_vm3 = vcmp.lt.f32.partialorder %v278_v36, 0.0004427343 }
  0x68   : > { %594 = vlog2.f32 %v263_v11  ;;  %v268_v42 = vmul.f32 %v587_v9, %v267_v29 }
  0x69   : > { %596 = vlog2.f32 %v272_v12  ;;  %v277_v44 = vmul.f32 %v589_v10, %v276_v33 }
  0x70   : > { %v591_v13 = vpop.eup %590 }
  0x71   : > { %v593_v14 = vpop.eup %592  ;;  %v291_v15 = vmul.f32 %v591_v13, %v587_v9 }
  0x72   : > { %v292_v16 = vmul.f32 %v593_v14, %v589_v10  ;;  %v595_v31 = vpop.eup %594 }
  0x73   : > { %v293_v17 = vsel %vm289_vm0, %v591_v13, %v291_v15  ;;  %v597_v35 = vpop.eup %596  ;;  %v265_v41 = vmul.f32 0.6931472, %v595_v31 }
  0x74   : > { %v294_v18 = vsel %vm290_vm1, %v593_v14, %v292_v16  ;;  %v295_v19 = vmul.f32 2.0, %v293_v17  ;;  %v274_v43 = vmul.f32 0.6931472, %v597_v35 }
  0x75   : > { %v296_v21 = vmul.f32 2.0, %v294_v18  ;;  %v271_v48 = vsel %vm270_vm2, %v268_v42, %v265_v41 }
  0x76   : > { %v297_v24 = vsub.f32 1.0, %v295_v19  ;;  %v280_v50 = vsel %vm279_vm3, %v277_v44, %v274_v43  ;;  %v281_v51 = vadd.f32 %v271_v48, %v261_v45 }
  0x77   : > { %v298_v26 = vsub.f32 1.0, %v296_v21  ;;  %v282_v54 = vadd.f32 %v280_v50, %v262_v47 }
  0x78   : > { %v299_v27 = vmul.f32 %v297_v24, %v247_v20  ;;  %v323_v62 = vmul.f32 %v305_v52, %v281_v51 }
  0x79   : > { %v300_v28 = vmul.f32 %v298_v26, %v248_v22  ;;  %v324_v1 = vmul.f32 %v306_v55, %v282_v54 }
  0x7a   : > { %v301_v30 = vadd.f32 %v299_v27, %v293_v17 }
  0x7b   : > { %v302_v34 = vadd.f32 %v300_v28, %v294_v18 }
  0x7c   : > { %598 = vrsqrt.f32 %v301_v30  ;;  %vm309_vm4 = vcmp.eq.f32.partialorder %v301_v30, inf  ;;  %v312_v56 = vand.u32 2147483648, %v301_v30  ;;  %vm311_vm5 = vcmp.eq.f32.partialorder %v301_v30, 0.0 }
  0x7d   : > { %600 = vrsqrt.f32 %v302_v34  ;;  %vm316_vm6 = vcmp.eq.f32.partialorder %v302_v34, inf  ;;  %v319_v59 = vand.u32 2147483648, %v302_v34  ;;  %vm318_vm7 = vcmp.eq.f32.partialorder %v302_v34, 0.0 }
  0x86   : > { %v599_v53 = vpop.eup %598 }
  0x87   : > { %v601_v57 = vpop.eup %600  ;;  %v308_v58 = vmul.f32 %v599_v53, %v301_v30 }
  0x88   : > { %v315_v60 = vmul.f32 %v601_v57, %v302_v34  ;;  %333 = sbr.rel (%p484_p2) target bundleno = 149 (0x95), region = 44 }
  0x89   : > { %v310_v61 = vsel %vm309_vm4, %v301_v30, %v308_v58 }
  0x8a   : > { %v313_v63 = vsel %vm311_vm5, %v312_v56, %v310_v61  ;;  %v317_v0 = vsel %vm316_vm6, %v302_v34, %v315_v60 }
  0x8b   : > { %v320_v2 = vsel %vm318_vm7, %v319_v59, %v317_v0  ;;  %v321_v3 = vmul.f32 %v313_v63, %v301_v30 }
  0x8c   : > { %v322_v4 = vmul.f32 %v320_v2, %v302_v34 }
  0x8d   : > { %v325_v5 = vmul.f32 %v323_v62, %v321_v3 }
  0x8e   : > { %v326_v6 = vmul.f32 %v324_v1, %v322_v4 }
  0x90   : > { %v335_v8 = vadd.f32 %v326_v6, %v325_v5 }
  0x92   : > { %v336_v9 = vadd.f32 %v335_v8, %v334_v7 }
  0x94   : > { %337 = vst [vmem:[%s945_s28] sm:$0xff] %v336_v9 }
  0x95 PF: > { %p485_p8 = scmp.ge.s32.totalorder %s943_s3, 16 }
  0x96   : > { %v342_v10 = vlaneseq (!%p485_p8)  ;;  %v345_v11 = vstv (!%p485_p8), %s943_s3 }
  0x97   : > { %341 = sbr.rel (%p485_p8) target bundleno = 163 (0xa3), region = 48 }
  0x98   : > { %v343_v12 = vshrl.u32 (!%p485_p8), %v342_v10, 7 }
  0x9a   : > { %v344_v13 = vadd.s32 (!%p485_p8), 8, %v343_v12  ;;  %vm346_vm8 = vcmp.lt.s32.totalorder (!%p485_p8), %v343_v12, %v345_v11 }
  0x9b   : > { %v348_v14 = vsel (!%p485_p8), %vm346_vm8, %v325_v5, 0.0  ;;  %v350_v16 = vld [vmem:[%s945_s28] sm:$0xff] (!%p485_p8) }
  0x9c   : > { %vm347_vm9 = vcmp.lt.s32.totalorder (!%p485_p8), %v344_v13, %v345_v11 }
  0x9d   : > { %v349_v15 = vsel (!%p485_p8), %vm347_vm9, %v326_v6, 0.0 }
  0x9e   : > { %v351_v17 = vadd.f32 %v349_v15, %v348_v14 }
  0xa0   : > { %v352_v18 = vadd.f32 %v351_v17, %v350_v16 }
  0xa2   : > { %353 = vst [vmem:[%s945_s28] sm:$0xff] %v352_v18 }
  0xa3 PF: > { %s487_s21 = sshll.u32 %s761_s14, 7  ;;  %s368_s23 = sshll.u32 %s945_s28, 4  ;;  %s369_s23 = int_to_ptr.vmem [resolvable:$true] %s368_s23 }
  0xa4   : > { %s961_s22 = scalar_lea.hbm %s1013_s2, %s487_s21  ;;  %s355_s30 = scalar_lea.sflag [#allocation4], %s229_s18 }
  0xa5   : > { %s662_s4 = scalar_lea.vmem %s369_s23, 128  ;;  %p1024_p10 = scmp.ne.s32.totalorder %s1018_s25, 0 }
  0xa6   : > { %p663_p9 = scmp.ne.s32.totalorder %s369_s23, %s662_s4  ;;  %s776_s5 = smov [#allocation7]  }
  0xa7   : > { %s666_s6 = sshll.u32 %s776_s5, 4  ;;  %s667_s6 = int_to_ptr.vmem [resolvable:$false] %s666_s6 }
  0xa8   : > { %p664_p11 = pnand %p663_p9, %p1024_p10  ;;  %s668_s7 = scalar_lea.vmem %s667_s6, 256 }
  0xa9   : > { %p669_p3 = scmp.lt.s32.totalorder %s369_s23, %s667_s6  ;;  %p670_p7 = scmp.lt.s32.totalorder %s668_s7, %s662_s4 }
  0xaa   : > { %p665_p1 = pneg %p664_p11 }
  0xab   : > { %p671_p13 = por %p670_p7, %p669_p3 }
  0xad   : > { %p672_p4 = pnand %p671_p13, %p665_p1 }
  0xaf   : > { %675 = shalt.err (!%p672_p4)
}
  0xb0   : > { %s676_s14 = scalar_lea.hbm %s961_s22, 128  ;;  %s680_s18 = scalar_lea.hbm %s1013_s2, 256 }
  0xb1   : > { %p677_p6 = scmp.ne.s32.totalorder %s961_s22, %s676_s14  ;;  %p681_p5 = scmp.lt.u32.totalorder %s961_s22, %s1013_s2 }
  0xb2   : > { %p682_p2 = scmp.lt.u32.totalorder %s680_s18, %s676_s14  ;;  %p684_p9 = scmp.lt.u32.totalorder %s676_s14, %s961_s22 }
  0xb3   : > { %p678_p12 = pnand %p677_p6, %p1024_p10 }
  0xb4   : > { %p683_p8 = por %p682_p2, %p681_p5 }
  0xb5   : > { %p679_p0 = pneg %p678_p12 }
  0xb6   : > { %p685_p11 = por %p684_p9, %p683_p8 }
  0xb8   : > { %p686_p1 = pnand %p685_p11, %p679_p0 }
  0xba   : > { %689 = shalt.err (!%p686_p1)
}
  0xbb   : > { %496 = dma.vmem_to_hbm [thread:$0]  (%p1024_p10), %s369_s23, 128, %s961_s22, %s355_s30  }
  0xbc PF: > { %s380_s3 = sand.u32 1, %s741_s9   ;;  %p1025_p3 = scmp.ne.s32.totalorder %s1019_s26, 0 }
  0xbd   : > { %p1026_p7 = scmp.ge.s32.totalorder %s769_s16, 2  ;;  %s381_s28 = scalar_lea.sflag [#allocation4], %s380_s3 }
  0xbf   : > { %p506_p13 = pnand %p1026_p7, %p1025_p3 }
  0xc1   : > { %735 = dma.done.wait (!%p506_p13), %s381_s28, 128  }
  0xc2   : > { %737 = vsyncadd (!%p506_p13), %s381_s28, 4294967168  ;;  %s21_s16 = sadd.s32 1, %s769_s16   ;;  %s1027_s9 = smov %s745_s10 }
  0xc3   : > { %p18_p4 = scmp.ge.s32.totalorder %s21_s16, 4   ;;  %s1028_s10 = smov %s749_s11 }
  0xc4   : > { %s1029_s11 = smov %s850_s24  ;;  %s1030_s12 = smov %s757_s13 }
  0xc5   : > { %s1001_s13 = smov 0   ;;  %s1031_s14 = smov %s765_s15 }
  0xc6   : > { %s1032_s15 = smov %s1034_s19  ;;  %20 = sbr.rel (!%p18_p4) target bundleno = 9 (0x9), region = 98 }
  0xcd   :  { %386 = vsyncpa [#allocation3], 1 }
  0xce   :  { %388 = vsyncpa [#allocation3 + $0x1], 1 }
  0xcf   :  { %389 = vsyncpa [#allocation6], 1 }
  0xd0   :  { %391 = vsyncpa [#allocation6 + $0x1], 1 }
  0xd1   :  { %392 = vsyncpa [#allocation4], 1 }
  0xd2   :  { %394 = vsyncpa [#allocation4 + $0x1], 1 }

</bundles_post_ra>
